<compile_context>
chip_gen: v7x
topology: tpu7x:2x2x1
jax: 0.10.0
libtpu: 0.0.40
codegen_flags: <defaults>
</compile_context>

<pallas_src>
import functools

import jax
import jax.numpy as jnp
from jax.experimental import pallas as pl
from jax.experimental.pallas import tpu as pltpu


def _soft_sort_kernel(tau, pw):
    inv_tau = 1.0 / float(tau)

    def kernel(scores_ref, sorted_ref, out_ref):
        s = scores_ref[...].astype(jnp.float32)      # (1, 1, N)      lanes = N
        srt = sorted_ref[...].astype(jnp.float32)    # (1, TILE_I, 1) sublanes = rows

        diff = s - srt                               # (1, TILE_I, N)
        if pw == 1.0:
            a = jnp.abs(diff)                        # VPU only
        elif pw == 2.0:
            a = diff * diff                          # |d|^2 without pow (VPU only)
        else:
            a = jnp.power(jnp.abs(diff), float(pw))  # generic fallback
        logits = a * (-inv_tau)

        # numerically stable softmax over the last (lane) axis
        m = jnp.max(logits, axis=-1, keepdims=True)
        e = jnp.exp(logits - m)
        denom = jnp.sum(e, axis=-1, keepdims=True)
        out_ref[...] = (e / denom).astype(out_ref.dtype)

    return kernel


def _choose_row_tile(n, target_bytes=2 * 1024 * 1024):
    """TILE_I: multiple of 8 dividing N, with f32 output block <= ~target_bytes."""
    cap = max(8, min(256, target_bytes // max(4 * n, 1)))
    cap -= cap % 8
    cap = max(cap, 8)
    if n <= cap:
        return n
    for t in range(cap, 7, -8):
        if n % t == 0:
            return t
    return n  # fallback: single row-block (still correct, just untiled)


@functools.partial(jax.jit, static_argnames=("tau", "pow"))
def soft_sort(scores, *, tau=1.0, pow=1.0):
    """scores: (B, N) float. Returns P_hat: (B, N, N), softmax over last axis."""
    B, N = scores.shape

    # TODO(synk): torch.sort has no clean Pallas TPU equivalent; the (tiny,
    # O(B*N)) descending value-sort runs as jnp.sort in the wrapper and only
    # the O(B*N^2) pairwise-diff + softmax runs inside the kernel.
    sorted_desc = -jnp.sort(-scores, axis=1)          # (B, N) descending values

    scores_r = scores.reshape(B, 1, N)                # free, contiguous reshape
    sorted_r = sorted_desc.reshape(B, N, 1)

    tile_i = _choose_row_tile(N)
    grid = (B, N // tile_i)

    out = pl.pallas_call(
        _soft_sort_kernel(float(tau), float(pow)),
        out_shape=jax.ShapeDtypeStruct((B, N, N), scores.dtype),
        grid=grid,
        in_specs=[
            # full score row per batch element (reused by every row tile)
            pl.BlockSpec((1, 1, N), lambda b, it: (b, 0, 0)),
            # tile of sorted values (the "i" rows of the output)
            pl.BlockSpec((1, tile_i, 1), lambda b, it: (b, it, 0)),
        ],
        out_specs=pl.BlockSpec((1, tile_i, N), lambda b, it: (b, it, 0)),
        compiler_params=pltpu.CompilerParams(
            dimension_semantics=("parallel", "parallel")),
    )(scores_r, sorted_r)
    return out


def _soft_sort_ref(scores, tau=1.0, pow=1.0):
    """Pure-JAX reference matching the PyTorch Soft_Sort forward."""
    s = scores[..., None]                             # (B, N, 1)
    srt = -jnp.sort(-s, axis=1)                       # descending along dim 1
    pd = -(jnp.abs(jnp.swapaxes(s, 1, 2) - srt) ** pow) / tau
    return jax.nn.softmax(pd, axis=-1)


if __name__ == "__main__":
    key = jax.random.PRNGKey(0)
    k1, k2 = jax.random.split(key)

    # Case 1: small, single row-tile per batch element.
    B, N = 2, 16
    scores = jax.random.normal(k1, (B, N), dtype=jnp.float32)
    out = jax.block_until_ready(soft_sort(scores, tau=1.0, pow=1.0))
    ref = _soft_sort_ref(scores, tau=1.0, pow=1.0)
    assert out.shape == (B, N, N)
    assert jnp.allclose(out, ref, rtol=1e-5, atol=1e-6), \
        float(jnp.max(jnp.abs(out - ref)))

    # Case 2: larger, exercises the tiled multi-step grid (tile_i=192, grid=(3,2)).
    B2, N2 = 3, 384
    scores2 = jax.random.normal(k2, (B2, N2), dtype=jnp.float32)
    out2 = jax.block_until_ready(soft_sort(scores2, tau=0.5, pow=1.0))
    ref2 = _soft_sort_ref(scores2, tau=0.5, pow=1.0)
    assert jnp.allclose(out2, ref2, rtol=1e-5, atol=1e-6), \
        float(jnp.max(jnp.abs(out2 - ref2)))

    # Case 3: pow=2 branch (kernel uses d*d; reference's `** 2.0` may lower via
    # exp/log, so tolerance is slightly looser).
    out3 = jax.block_until_ready(soft_sort(scores, tau=1.0, pow=2.0))
    ref3 = _soft_sort_ref(scores, tau=1.0, pow=2.0)
    assert jnp.allclose(out3, ref3, rtol=5e-4, atol=1e-6), \
        float(jnp.max(jnp.abs(out3 - ref3)))

    print("KERNEL_OK")
</pallas_src>

<mosaic_0001>
module attributes {stable_mosaic.version = 11 : i64} {
  func.func @kernel(%arg0: i32, %arg1: i32, %arg2: memref<1x1x16xf32, #tpu.memory_space<vmem>>, %arg3: memref<1x16x1xf32, #tpu.memory_space<vmem>>, %arg4: memref<1x16x16xf32, #tpu.memory_space<vmem>>) attributes {dimension_semantics = [#tpu.dimension_semantics<parallel>, #tpu.dimension_semantics<parallel>], iteration_bounds = array<i64: 2, 1>, scalar_prefetch = 0 : i64, scratch_operands = 0 : i64, tpu.core_type = #tpu.core_type<tc>, window_params = [{transform_indices = @transform_0, window_bounds = array<i64: 1, 1, 16>}, {transform_indices = @transform_1, window_bounds = array<i64: 1, 16, 1>}, {transform_indices = @transform_2, window_bounds = array<i64: 1, 16, 16>}]} {
    %c0 = arith.constant 0 : index
    %c0_0 = arith.constant 0 : index
    %c0_1 = arith.constant 0 : index
    %0 = vector.load %arg2[%c0, %c0_0, %c0_1] : memref<1x1x16xf32, #tpu.memory_space<vmem>>, vector<1x1x16xf32>
    %c0_2 = arith.constant 0 : index
    %c0_3 = arith.constant 0 : index
    %c0_4 = arith.constant 0 : index
    %1 = vector.load %arg3[%c0_2, %c0_3, %c0_4] : memref<1x16x1xf32, #tpu.memory_space<vmem>>, vector<1x16x1xf32>
    %2 = vector.broadcast %0 : vector<1x1x16xf32> to vector<1x16x16xf32>
    %3 = vector.broadcast %1 : vector<1x16x1xf32> to vector<1x16x16xf32>
    %4 = arith.subf %2, %3 : vector<1x16x16xf32>
    %5 = math.absf %4 : vector<1x16x16xf32>
    %cst = arith.constant -1.000000e+00 : f32
    %6 = vector.broadcast %cst : f32 to vector<1x16x16xf32>
    %7 = arith.mulf %5, %6 : vector<1x16x16xf32>
    %cst_5 = arith.constant dense<0xFF800000> : vector<1x16xf32>
    %8 = vector.multi_reduction <maximumf>, %7, %cst_5 [2] : vector<1x16x16xf32> to vector<1x16xf32>
    %9 = vector.shape_cast %8 : vector<1x16xf32> to vector<1x16x1xf32>
    %10 = vector.broadcast %9 : vector<1x16x1xf32> to vector<1x16x16xf32>
    %11 = arith.subf %7, %10 : vector<1x16x16xf32>
    %12 = math.exp %11 : vector<1x16x16xf32>
    %cst_6 = arith.constant dense<0.000000e+00> : vector<1x16xf32>
    %13 = vector.multi_reduction <add>, %12, %cst_6 [2] : vector<1x16x16xf32> to vector<1x16xf32>
    %14 = vector.shape_cast %13 : vector<1x16xf32> to vector<1x16x1xf32>
    %15 = vector.broadcast %14 : vector<1x16x1xf32> to vector<1x16x16xf32>
    %16 = arith.divf %12, %15 : vector<1x16x16xf32>
    %c0_7 = arith.constant 0 : index
    %c0_8 = arith.constant 0 : index
    %c0_9 = arith.constant 0 : index
    %17 = vector.load %arg4[%c0_7, %c0_8, %c0_9] : memref<1x16x16xf32, #tpu.memory_space<vmem>>, vector<1x16x16xf32>
    tpu.vector_store %arg4[%c0_7, %c0_8, %c0_9], %16 {strides = array<i32>} : memref<1x16x16xf32, #tpu.memory_space<vmem>>, vector<1x16x16xf32>,
    return
  }
  func.func @transform_0(%arg0: i32, %arg1: i32) -> (i32, i32, i32) {
    %c0_i32 = arith.constant 0 : i32
    %c0_i32_0 = arith.constant 0 : i32
    %c0_i32_1 = arith.constant 0 : i32
    return %arg0, %c0_i32, %c0_i32_0 : i32, i32, i32
  }
  func.func @transform_1(%arg0: i32, %arg1: i32) -> (i32, i32, i32) {
    %c0_i32 = arith.constant 0 : i32
    %c0_i32_0 = arith.constant 0 : i32
    return %arg0, %arg1, %c0_i32 : i32, i32, i32
  }
  func.func @transform_2(%arg0: i32, %arg1: i32) -> (i32, i32, i32) {
    %c0_i32 = arith.constant 0 : i32
    %c0_i32_0 = arith.constant 0 : i32
    return %arg0, %arg1, %c0_i32 : i32, i32, i32
  }
}

</mosaic_0001>

<bundles_post_ra>
// kernel: neg.2
= control target key start
LH: loop header
LB: loop body
LE: loop exit
PB: predicated region body
PF: predicated region fallthrough
CT: control target
= control target key end

     0   :  { %s24_s0 = inlined_call_operand.vmem [shape: f32[2,16], index: 0, kind: input, shape index: {}]   ;;  %s25_s1 = inlined_call_operand.vmem [shape: f32[2,16], index: 1, kind: output, shape index: {}]  }
   0x1   :  { %v2_v0 = vld [vmem:[%s24_s0] sm:$0x3] }
   0x2   :  { %v5_v1 = vxor.u32 2147483648, %v2_v0 }
   0x4   :  { %7 = vst [vmem:[%s25_s1] sm:$0x3] %v5_v1 }

// kernel: soft_sort.1
= control target key start
LH: loop header
LB: loop body
LE: loop exit
PB: predicated region body
PF: predicated region fallthrough
CT: control target
= control target key end

     0   :  { %7 = vsyncpa [#allocation3], 0  ;;  %s647_s0 = inlined_call_operand.vmem [shape: f32[2,1,16], index: 0, kind: input, shape index: {}]   ;;  %s648_s1 = inlined_call_operand.vmem [shape: f32[2,16,1], index: 1, kind: input, shape index: {}]   ;;  %s649_s2 = inlined_call_operand.hbm [shape: f32[2,16,16], index: 2, kind: output, shape index: {}]  }
   0x1   :  { %9 = vsyncpa [#allocation3 + $0x1], 0  ;;  %s523_s9 = smov 0   ;;  %s525_s10 = smov 0  }
   0x2   :  { %s527_s11 = smov 0   ;;  %s529_s12 = smov 0  }
   0x3   :  { %s531_s13 = smov 0   ;;  %s533_s14 = smov 0  }
   0x4 LB: > { %s341_s15 = sadd.s32 4294967295, %s502_s14   ;;  %s342_s16 = sadd.s32 4294967294, %s502_s14   ;;  %s502_s14 = sphi %s533_s14, %s15_s14   ;;  %s498_s13 = sphi %s531_s13, %s656_s13   ;;  %s494_s12 = sphi %s529_s12, %s655_s12   ;;  %s490_s11 = sphi %s527_s11, %s654_s11   ;;  %s486_s10 = sphi %s525_s10, %s653_s10   ;;  %s482_s9 = sphi %s523_s9, %s652_s9  }
   0x5   : > { %s27_s17 = sadd.s32 1, %s498_s13  ;;  %s90_s18 = sadd.s32 1, %s490_s11 }
   0x6   : > { %p29_p0 = scmp.ge.s32.totalorder %s27_s17, 2  ;;  %p100_p1 = scmp.ne.s32.totalorder %s490_s11, %s486_s10 }
   0x7   : > { %p101_p2 = scmp.eq.s32.totalorder %s341_s15, 1  ;;  %p106_p3 = scmp.ne.s32.totalorder %s486_s10, %s482_s9 }
   0x8   : > { %s658_s17 = smov (%p29_p0, %s27_s17), 0  ;;  %p107_p5 = scmp.eq.s32.totalorder %s342_s16, 1 }
   0x9   : > { %p563_p4 = por %p101_p2, %p100_p1  ;;  %s85_s20 = ssub.s32 %s498_s13, %s658_s17 }
   0xa   : > { %p345_p6 = scmp.ge.s32.totalorder %s502_s14, 1  ;;  %p88_p7 = scmp.eq.s32.totalorder %s85_s20, 0 }
   0xb   : > { %p570_p8 = por %p107_p5, %p106_p3  ;;  %p144_p9 = scmp.lt.s32.totalorder %s502_s14, 3 }
   0xc   : > { %s576_s22 = scalar_select %p88_p7, %s490_s11, %s90_s18  }
   0xd   : > { %p145_p10 = pnand %p345_p6, %p144_p9 }
   0xe   : > { %p173_p11 = scmp.lt.s32.totalorder (!%p145_p10), %s494_s12, 1  ;;  %v504_v0 = vmov (!%p145_p10), 0   ;;  %vm212_vm0 = vcmask (!%p145_p10), 130048   ;;  %s170_s3 = sand.u32 (!%p145_p10), 1, %s486_s10  }
   0xf   : > { %148 = sbr.rel (%p145_p10) target bundleno = 494 (0x1ee), region = 28  ;;  %415 = vset.pattern.permute.xlu0 (!%p145_p10), %v504_v0  ;;  %s346_s4 = sshll.u32 (!%p145_p10), %s170_s3, 4 }
  0x10   : > { %s356_s5 = sshll.u32 (!%p145_p10), %s494_s12, 8  ;;  %s172_s6 = scalar_lea.vmem (!%p145_p10), [#allocation2], %s346_s4 }
  0x11   : > { %s253_s7 = sshll.u32 (!%p145_p10), %s172_s6, 4  ;;  %s596_s16 = scalar_lea.hbm (!%p145_p10), %s649_s2, %s356_s5  ;;  %s598_s7 = int_to_ptr.vmem [resolvable:$true] %s253_s7 }
  0x12   : > { %s601_s18 = scalar_lea.sflag (!%p145_p10), [#allocation3], %s170_s3  ;;  %s505_s20 = smov (!%p145_p10), [#allocation2]  }
  0x16   : > { %s174_s23 = scalar_select %p173_p11, %s494_s12, 1 }
  0x17   : > { %s424_s12 = scalar_lea.vmem %s598_s7, 256 }
  0x18   : > { %s355_s24 = sshll.u32 %s174_s23, 4  ;;  %s175_s30 = scalar_lea.vmem %s647_s0, %s174_s23 }
  0x19   : > { %s184_s27 = scalar_lea.vmem %s648_s1, %s355_s24  ;;  %v349_v3 = vld [vmem:[%s175_s30] ss:$0 sm:$0xff]  ;;  %p425_p12 = scmp.ne.s32.totalorder %s598_s7, %s424_s12 }
  0x1a   : > { %v188_v1 = vld [vmem:[%s184_s27] sm:$0xff]  ;;  %v189_v2 = vld [vmem:[%s184_s27 + $0x8] sm:$0xff]  ;;  %s428_s23 = sshll.u32 %s505_s20, 4  ;;  %s429_s23 = int_to_ptr.vmem [resolvable:$false] %s428_s23 }
  0x1b   : > { %198 = vperm.xlu0 %415, %v188_v1   ;;  %p426_p13 = pnand %p425_p12, %p563_p4  ;;  %s430_s24 = scalar_lea.vmem %s429_s23, 512 }
  0x1c   : > { %p431_p1 = scmp.lt.s32.totalorder %s598_s7, %s429_s23  ;;  %p432_p2 = scmp.lt.s32.totalorder %s430_s24, %s424_s12 }
  0x1d   : > { %p427_p0 = pneg %p426_p13 }
  0x1e   : > { %p433_p3 = por %p432_p2, %p431_p1 }
  0x1f   : > { %203 = vperm.xlu0 %415, %v189_v2  }
  0x20   : > { %p434_p5 = pnand %p433_p3, %p427_p0 }
  0x9a   : > { %v199_v4 = vpop.permute.xlu0 %198 }
  0x9b   : > { %v206_v5 = vsub.f32 %v349_v3, %v199_v4 }
  0x9d   : > { %v208_v6 = vand.u32 2147483647, %v206_v5 }
  0x9e   : > { %v204_v7 = vpop.permute.xlu0 %203 }
  0x9f   : > { %v210_v8 = vmul.f32 -1.0, %v208_v6  ;;  %v207_v9 = vsub.f32 %v349_v3, %v204_v7 }
  0xa1   : > { %v209_v10 = vand.u32 2147483647, %v207_v9  ;;  %v213_v11 = vsel %vm212_vm0, %v210_v8, -inf }
  0xa2   : > { %214 = vmax.xlane.f32.xlu1 %v213_v11 }
  0xa3   : > { %v211_v12 = vmul.f32 -1.0, %v209_v10 }
  0xa5   : > { %v216_v13 = vsel %vm212_vm0, %v211_v12, -inf }
  0xa6   : > { %217 = vmax.xlane.f32.xlu1 %v216_v13 }
 0x12f   : > { %v215_v14 = vpop.xlane.xlu1 %214 }
 0x130   : > { %v219_v15 = vsub.f32 %v210_v8, %v215_v14 }
 0x132   : > { %v221_v16 = vmul.f32 1.442695, %v219_v15 }
 0x133   : > { %v218_v17 = vpop.xlane.xlu1 %217 }
 0x134   : > { %416 = vpow2.f32 %v221_v16  ;;  %v220_v18 = vsub.f32 %v211_v12, %v218_v17 }
 0x136   : > { %v223_v19 = vmul.f32 1.442695, %v220_v18 }
 0x138   : > { %418 = vpow2.f32 %v223_v19 }
 0x13e   : > { %v417_v20 = vpop.eup %416 }
 0x13f   : > { %v225_v21 = vsel %vm212_vm0, %v417_v20, 0.0 }
 0x140   : > { %226 = vadd.xlane.f32.xlu0 %v225_v21 }
 0x142   : > { %v419_v22 = vpop.eup %418 }
 0x143   : > { %v228_v23 = vsel %vm212_vm0, %v419_v22, 0.0 }
 0x144   : > { %229 = vadd.xlane.f32.xlu1 %v228_v23 }
 0x1cd   : > { %v227_v24 = vpop.xlane.xlu0 %226 }
 0x1ce   : > { %420 = vrcp.f32 %v227_v24 }
 0x1d1   : > { %v230_v25 = vpop.xlane.xlu1 %229 }
 0x1d2   : > { %422 = vrcp.f32 %v230_v25 }
 0x1d8   : > { %v421_v26 = vpop.eup %420 }
 0x1d9   : > { %v232_v27 = vmul.f32 %v421_v26, %v417_v20 }
 0x1db   : > { %235 = vst.msk [vmem:[%s172_s6] sm:$0xff] %vm212_vm0, %v232_v27 }
 0x1dc   : > { %v423_v28 = vpop.eup %422 }
 0x1dd   : > { %v234_v29 = vmul.f32 %v423_v28, %v419_v22 }
 0x1df   : > { %236 = vst.msk [vmem:[%s172_s6 + $0x8] sm:$0xff] %vm212_vm0, %v234_v29 }
 0x1e0   : > { %437 = shalt.err (!%p434_p5)
}
 0x1e1   : > { %s438_s25 = scalar_lea.hbm %s596_s16, 256  ;;  %s442_s28 = scalar_lea.hbm %s649_s2, 512 }
 0x1e2   : > { %p439_p6 = scmp.ne.s32.totalorder %s596_s16, %s438_s25  ;;  %p443_p10 = scmp.lt.u32.totalorder %s596_s16, %s649_s2 }
 0x1e3   : > { %p444_p11 = scmp.lt.u32.totalorder %s442_s28, %s438_s25  ;;  %p446_p13 = scmp.lt.u32.totalorder %s438_s25, %s596_s16 }
 0x1e4   : > { %p440_p7 = pnand %p439_p6, %p563_p4 }
 0x1e5   : > { %p445_p12 = por %p444_p11, %p443_p10 }
 0x1e6   : > { %p441_p9 = pneg %p440_p7 }
 0x1e7   : > { %p447_p0 = por %p446_p13, %p445_p12 }
 0x1e9   : > { %p448_p1 = pnand %p447_p0, %p441_p9 }
 0x1eb   : > { %451 = shalt.err (!%p448_p1)
}
 0x1ec   : > { %s506_s3 = smov 128   ;;  %s507_s4 = smov 8  }
 0x1ed   : > { %357 = dma.vmem_to_hbm [thread:$0]  (%p563_p4), %s598_s7, 256, %s596_s16, %s601_s18, %s506_s3, %s506_s3, %s507_s4  }
 0x1ee PF: > { %p363_p2 = scmp.ge.s32.totalorder %s502_s14, 2  ;;  %s268_s5 = sand.u32 1, %s482_s9  }
 0x1ef   : > { %s269_s6 = scalar_lea.sflag [#allocation3], %s268_s5 }
 0x1f0   : > { %p360_p3 = pnand %p363_p2, %p570_p8 }
 0x1f2   : > { %477 = dma.done.wait (!%p360_p3), %s269_s6, 256  }
 0x1f3   : > { %479 = vsyncadd (!%p360_p3), %s269_s6, 4294967040  ;;  %s15_s14 = sadd.s32 1, %s502_s14   ;;  %s652_s9 = smov %s486_s10 }
 0x1f4   : > { %p12_p5 = scmp.ge.s32.totalorder %s15_s14, 4   ;;  %s653_s10 = smov %s490_s11 }
 0x1f5   : > { %s654_s11 = smov %s576_s22  ;;  %s655_s12 = smov %s498_s13 }
 0x1f6   : > { %s656_s13 = smov %s658_s17  ;;  %14 = sbr.rel (!%p12_p5) target bundleno = 4 (0x4), region = 66 }
 0x1fd   :  { %274 = vsyncpa [#allocation3], 1 }
 0x1fe   :  { %276 = vsyncpa [#allocation3 + $0x1], 1 }

</bundles_post_ra>
